<compile_context>
chip_gen: v7x
topology: tpu7x:2x2x1
jax: 0.10.0
libtpu: 0.0.40
codegen_flags: <defaults>
</compile_context>

<pallas_src>
import jax
import jax.numpy as jnp
from jax import lax
from jax.experimental import pallas as pl
from jax.experimental.pallas import tpu as pltpu

EPS = 1e-5  # PyTorch BatchNorm2d default eps


# ----------------------------------------------------------------------------
# Fused kernel: per-quadrant non-local attention + 1x1 convs + BN + residual
# ----------------------------------------------------------------------------
def _nonlocal_quadrant_kernel(x_ref, wqkv_ref, bqkv_ref, ww_ref, bw_ref,
                              gamma_ref, beta_ref, out_ref):
    # x_ref    : (1, B, N, C)  one quadrant, all batch elements (token-major)
    # wqkv_ref : (C, 3*Cp) bf16   fused g | theta | phi 1x1-conv weights
    # bqkv_ref : (1, 3*Cp) f32    fused biases
    # ww_ref   : (Cp, C) bf16, bw_ref : (1, C) f32   final "W" 1x1 conv
    # gamma/beta_ref : (1, C) f32 BatchNorm affine
    # out_ref  : (1, B, N, C)     z = BN(W_y) + x
    f32 = jnp.float32
    bf16 = jnp.bfloat16
    _, B, N, C = x_ref.shape
    Cp = ww_ref.shape[0]

    x = x_ref[0]                                    # (B, N, C) f32
    x2 = x.reshape(B * N, C)

    # --- fused g/theta/phi projection: one (B*N, C) @ (C, 3*Cp) matmul ------
    proj = jnp.dot(x2.astype(bf16), wqkv_ref[...],
                   preferred_element_type=f32) + bqkv_ref[...]     # (B*N, 3Cp)
    proj = proj.reshape(B, N, 3 * Cp)
    fx = proj[:, :, :Cp]                            # g(x)
    th = proj[:, :, Cp:2 * Cp]                      # theta(x)
    ph = proj[:, :, 2 * Cp:]                        # phi(x)

    # --- embedded-gaussian attention (batched over B) ------------------------
    # NOTE: materializes the (N, N) score matrix; for large H*W (N >~ 1k)
    # this should be KV-tiled with an online softmax (fine at these shapes).
    s = jnp.einsum("bnc,bmc->bnm", th.astype(bf16), ph.astype(bf16),
                   preferred_element_type=f32)                      # (B, N, N)
    s = s - jnp.max(s, axis=-1, keepdims=True)
    p = jnp.exp(s)                                                  # unnormalized
    l = jnp.sum(p, axis=-1, keepdims=True)                          # (B, N, 1)

    y = jnp.einsum("bnm,bmc->bnc", p.astype(bf16), fx.astype(bf16),
                   preferred_element_type=f32)                      # (B, N, Cp)
    y = y * pl.reciprocal(l, approx=True)           # normalize on (N,Cp) via EUP

    # --- final 1x1 conv "W" ---------------------------------------------------
    wy = jnp.dot(y.reshape(B * N, Cp).astype(bf16), ww_ref[...],
                 preferred_element_type=f32) + bw_ref[...]          # (B*N, C)

    # --- training-mode BatchNorm2d: per-channel stats over batch + spatial ---
    mean = jnp.mean(wy, axis=0, keepdims=True)                      # (1, C)
    var = jnp.mean((wy - mean) ** 2, axis=0, keepdims=True)         # biased var
    scale = gamma_ref[...] * lax.rsqrt(var + EPS)
    z = (wy - mean) * scale + beta_ref[...]

    # --- residual -------------------------------------------------------------
    out_ref[0] = (z.reshape(B, N, C) + x).astype(out_ref.dtype)


# ----------------------------------------------------------------------------
# NONLocal2D forward
# ----------------------------------------------------------------------------
def nonlocal2d_forward(x, params):
    """x: (B, C, H, W) NCHW, as in the PyTorch module."""
    B, C, H, W = x.shape
    H1, W1 = H // 2, W // 2
    N = H1 * W1
    Cp = params["w_w"].shape[0]

    # NCHW -> (4 quadrants, B, N=H1*W1, C) in one reshape + one transpose.
    xq = (x.reshape(B, C, 2, H1, 2, W1)
            .transpose(2, 4, 0, 3, 5, 1)
            .reshape(4, B, N, C))

    # Fuse g/theta/phi weights; cast matmul weights to bf16 (f32 accumulate).
    wqkv = jnp.concatenate(
        [params["w_g"], params["w_theta"], params["w_phi"]], axis=1
    ).astype(jnp.bfloat16)                                           # (C, 3Cp)
    bqkv = jnp.concatenate(
        [params["b_g"], params["b_theta"], params["b_phi"]], axis=1)  # (1, 3Cp)
    ww = params["w_w"].astype(jnp.bfloat16)                          # (Cp, C)
    bw = params["b_w"]                                               # (1, C)
    gamma = params["bn_gamma"].reshape(1, C)
    beta = params["bn_beta"].reshape(1, C)

    tile = pl.BlockSpec((1, B, N, C), lambda q: (q, 0, 0, 0))
    full = lambda r, c: pl.BlockSpec((r, c), lambda q: (0, 0))

    z = pl.pallas_call(
        _nonlocal_quadrant_kernel,
        out_shape=jax.ShapeDtypeStruct((4, B, N, C), jnp.float32),
        grid=(4,),
        in_specs=[
            tile,
            full(C, 3 * Cp), full(1, 3 * Cp),   # fused g|theta|phi
            full(Cp, C), full(1, C),            # W
            full(1, C), full(1, C),             # BN gamma / beta
        ],
        out_specs=tile,
        compiler_params=pltpu.CompilerParams(
            dimension_semantics=("parallel",)),
    )(xq, wqkv, bqkv, ww, bw, gamma, beta)

    # (4, B, N, C) -> NCHW, inverting the forward transform.
    return (z.reshape(2, 2, B, H1, W1, C)
              .transpose(2, 5, 0, 3, 1, 4)
              .reshape(B, C, H, W))


# ----------------------------------------------------------------------------
# Pure-JAX f32 reference (for validation)
# ----------------------------------------------------------------------------
def _nonlocal_block_ref(xq, params):
    # xq: (B, N, C)
    fx = xq @ params["w_g"] + params["b_g"]
    th = xq @ params["w_theta"] + params["b_theta"]
    ph = xq @ params["w_phi"] + params["b_phi"]
    f = jnp.einsum("bnc,bmc->bnm", th, ph)
    f = jax.nn.softmax(f, axis=-1)
    y = jnp.einsum("bnm,bmc->bnc", f, fx)
    wy = y @ params["w_w"] + params["b_w"]
    mean = jnp.mean(wy, axis=(0, 1))
    var = jnp.mean((wy - mean) ** 2, axis=(0, 1))
    wy_bn = params["bn_gamma"] * (wy - mean) / jnp.sqrt(var + EPS) + params["bn_beta"]
    return wy_bn + xq


def reference_forward(x, params):
    B, C, H, W = x.shape
    H1, W1 = H // 2, W // 2
    quads = [x[:, :, :H1, :W1], x[:, :, H1:, :W1], x[:, :, :H1, W1:], x[:, :, H1:, W1:]]
    outs = []
    for q in quads:
        qf = jnp.transpose(q, (0, 2, 3, 1)).reshape(B, H1 * W1, C)
        o = _nonlocal_block_ref(qf, params)
        outs.append(o.reshape(B, H1, W1, C).transpose(0, 3, 1, 2))
    lu, ld, ru, rd = outs
    top = jnp.concatenate([lu, ru], axis=3)
    bot = jnp.concatenate([ld, rd], axis=3)
    return jnp.concatenate([top, bot], axis=2)


# ----------------------------------------------------------------------------
# Deterministic parameter init (shapes per module __init__)
# ----------------------------------------------------------------------------
def init_params(key, C, Cp):
    ks = jax.random.split(key, 10)
    s = 0.1
    return {
        # 1x1 conv weights stored as (C_in, C_out) matmul matrices
        "w_g": jax.random.normal(ks[0], (C, Cp), jnp.float32) * s,
        "b_g": jax.random.normal(ks[1], (1, Cp), jnp.float32) * s,
        "w_theta": jax.random.normal(ks[2], (C, Cp), jnp.float32) * s,
        "b_theta": jax.random.normal(ks[3], (1, Cp), jnp.float32) * s,
        "w_phi": jax.random.normal(ks[4], (C, Cp), jnp.float32) * s,
        "b_phi": jax.random.normal(ks[5], (1, Cp), jnp.float32) * s,
        "w_w": jax.random.normal(ks[6], (Cp, C), jnp.float32) * s,
        "b_w": jax.random.normal(ks[7], (1, C), jnp.float32) * s,
        # module __init__ sets these to 0 (degenerate); random here so the
        # non-local branch contributes to the output.
        "bn_gamma": 1.0 + jax.random.normal(ks[8], (C,), jnp.float32) * s,
        "bn_beta": jax.random.normal(ks[9], (C,), jnp.float32) * s,
    }


if __name__ == "__main__":
    key = jax.random.PRNGKey(0)
    kx, kp = jax.random.split(key)

    B, C, H, W = 2, 64, 16, 16      # in_feat=64 (module default)
    Cp = 32                         # inter_feat=32
    x = jax.random.normal(kx, (B, C, H, W), jnp.float32)
    params = init_params(kp, C, Cp)

    out = jax.jit(nonlocal2d_forward)(x, params)
    out = jax.block_until_ready(out)

    ref = reference_forward(x, params)
    assert out.shape == x.shape
    # bf16 MXU operands vs a pure-f32 reference: the training-mode BatchNorm
    # divides W_y by its (small) per-channel batch std, which amplifies the
    # bf16 rounding of the attention logits, so the tolerance is looser than
    # a pure-f32 kernel would need.
    max_err = float(jnp.max(jnp.abs(out - ref)))
    assert bool(jnp.allclose(out, ref, atol=1e-1, rtol=1e-1)), max_err

    print("KERNEL_OK")
</pallas_src>

<mosaic_0001>
module attributes {stable_mosaic.version = 11 : i64} {
  func.func @_nonlocal_quadrant_kernel(%arg0: i32, %arg1: memref<1x2x64x64xf32, #tpu.memory_space<vmem>>, %arg2: memref<64x96xbf16, #tpu.memory_space<vmem>>, %arg3: memref<1x96xf32, #tpu.memory_space<vmem>>, %arg4: memref<32x64xbf16, #tpu.memory_space<vmem>>, %arg5: memref<1x64xf32, #tpu.memory_space<vmem>>, %arg6: memref<1x64xf32, #tpu.memory_space<vmem>>, %arg7: memref<1x64xf32, #tpu.memory_space<vmem>>, %arg8: memref<1x2x64x64xf32, #tpu.memory_space<vmem>>) attributes {dimension_semantics = [#tpu.dimension_semantics<parallel>], iteration_bounds = array<i64: 4>, scalar_prefetch = 0 : i64, scratch_operands = 0 : i64, tpu.core_type = #tpu.core_type<tc>, window_params = [{transform_indices = @transform_0, window_bounds = array<i64: 1, 2, 64, 64>}, {pipeline_mode = #tpu.pipeline_mode<synchronous>, transform_indices = @transform_1, window_bounds = array<i64: 64, 96>}, {pipeline_mode = #tpu.pipeline_mode<synchronous>, transform_indices = @transform_2, window_bounds = array<i64: 1, 96>}, {pipeline_mode = #tpu.pipeline_mode<synchronous>, transform_indices = @transform_3, window_bounds = array<i64: 32, 64>}, {pipeline_mode = #tpu.pipeline_mode<synchronous>, transform_indices = @transform_4, window_bounds = array<i64: 1, 64>}, {pipeline_mode = #tpu.pipeline_mode<synchronous>, transform_indices = @transform_5, window_bounds = array<i64: 1, 64>}, {pipeline_mode = #tpu.pipeline_mode<synchronous>, transform_indices = @transform_6, window_bounds = array<i64: 1, 64>}, {transform_indices = @transform_7, window_bounds = array<i64: 1, 2, 64, 64>}]} {
    %c0 = arith.constant 0 : index
    %c0_0 = arith.constant 0 : index
    %c0_1 = arith.constant 0 : index
    %c0_2 = arith.constant 0 : index
    %0 = vector.load %arg1[%c0, %c0_0, %c0_1, %c0_2] : memref<1x2x64x64xf32, #tpu.memory_space<vmem>>, vector<1x2x64x64xf32>
    %1 = vector.shape_cast %0 : vector<1x2x64x64xf32> to vector<2x64x64xf32>
    %2 = vector.shape_cast %1 : vector<2x64x64xf32> to vector<128x64xf32>
    %3 = arith.truncf %2 : vector<128x64xf32> to vector<128x64xbf16>
    %c0_3 = arith.constant 0 : index
    %c0_4 = arith.constant 0 : index
    %4 = vector.load %arg2[%c0_3, %c0_4] : memref<64x96xbf16, #tpu.memory_space<vmem>>, vector<64x96xbf16>
    %cst = arith.constant dense<0.000000e+00> : vector<128x96xf32>
    %5 = tpu.matmul %3, %4, %cst {dimension_numbers = #tpu.dot_dimension_numbers<[1], [0], [0], [1], [0, 0, 1, 1], [], []>} : vector<128x64xbf16>, vector<64x96xbf16>, vector<128x96xf32> -> vector<128x96xf32>
    %c0_5 = arith.constant 0 : index
    %c0_6 = arith.constant 0 : index
    %6 = vector.load %arg3[%c0_5, %c0_6] : memref<1x96xf32, #tpu.memory_space<vmem>>, vector<1x96xf32>
    %7 = vector.broadcast %6 : vector<1x96xf32> to vector<128x96xf32>
    %8 = arith.addf %5, %7 : vector<128x96xf32>
    %9 = vector.shape_cast %8 : vector<128x96xf32> to vector<2x64x96xf32>
    %10 = vector.extract_strided_slice %9 {offsets = [0, 0, 0], sizes = [2, 64, 32], strides = [1, 1, 1]} : vector<2x64x96xf32> to vector<2x64x32xf32>
    %11 = vector.extract_strided_slice %9 {offsets = [0, 0, 32], sizes = [2, 64, 32], strides = [1, 1, 1]} : vector<2x64x96xf32> to vector<2x64x32xf32>
    %12 = vector.extract_strided_slice %9 {offsets = [0, 0, 64], sizes = [2, 64, 32], strides = [1, 1, 1]} : vector<2x64x96xf32> to vector<2x64x32xf32>
    %13 = arith.truncf %11 : vector<2x64x32xf32> to vector<2x64x32xbf16>
    %14 = arith.truncf %12 : vector<2x64x32xf32> to vector<2x64x32xbf16>
    "tpu.trace_start"() <{level = 10 : i32, message = "bnc,bmc->bnm"}> : () -> ()
    %cst_7 = arith.constant dense<0.000000e+00> : vector<2x64x64xf32>
    %15 = tpu.matmul %13, %14, %cst_7 {dimension_numbers = #tpu.dot_dimension_numbers<[2], [2], [1], [1], [0, 0, 0, 1, 1, 1], [0], [0]>} : vector<2x64x32xbf16>, vector<2x64x32xbf16>, vector<2x64x64xf32> -> vector<2x64x64xf32>
    "tpu.trace_stop"() : () -> ()
    %cst_8 = arith.constant dense<0xFF800000> : vector<2x64xf32>
    %16 = vector.multi_reduction <maximumf>, %15, %cst_8 [2] : vector<2x64x64xf32> to vector<2x64xf32>
    %17 = vector.shape_cast %16 : vector<2x64xf32> to vector<2x64x1xf32>
    %18 = vector.broadcast %17 : vector<2x64x1xf32> to vector<2x64x64xf32>
    %19 = arith.subf %15, %18 : vector<2x64x64xf32>
    %20 = math.exp %19 : vector<2x64x64xf32>
    %cst_9 = arith.constant dense<0.000000e+00> : vector<2x64xf32>
    %21 = vector.multi_reduction <add>, %20, %cst_9 [2] : vector<2x64x64xf32> to vector<2x64xf32>
    %22 = vector.shape_cast %21 : vector<2x64xf32> to vector<2x64x1xf32>
    %23 = arith.truncf %20 : vector<2x64x64xf32> to vector<2x64x64xbf16>
    %24 = arith.truncf %10 : vector<2x64x32xf32> to vector<2x64x32xbf16>
    "tpu.trace_start"() <{level = 10 : i32, message = "bnm,bmc->bnc"}> : () -> ()
    %cst_10 = arith.constant dense<0.000000e+00> : vector<2x64x32xf32>
    %25 = tpu.matmul %23, %24, %cst_10 {dimension_numbers = #tpu.dot_dimension_numbers<[2], [1], [1], [2], [0, 0, 0, 1, 1, 2], [0], [0]>} : vector<2x64x64xbf16>, vector<2x64x32xbf16>, vector<2x64x32xf32> -> vector<2x64x32xf32>
    "tpu.trace_stop"() : () -> ()
    %26 = tpu.reciprocal %22 {approx = true} : vector<2x64x1xf32> -> vector<2x64x1xf32>
    %27 = vector.broadcast %26 : vector<2x64x1xf32> to vector<2x64x32xf32>
    %28 = arith.mulf %25, %27 : vector<2x64x32xf32>
    %29 = vector.shape_cast %28 : vector<2x64x32xf32> to vector<128x32xf32>
    %30 = arith.truncf %29 : vector<128x32xf32> to vector<128x32xbf16>
    %c0_11 = arith.constant 0 : index
    %c0_12 = arith.constant 0 : index
    %31 = vector.load %arg4[%c0_11, %c0_12] : memref<32x64xbf16, #tpu.memory_space<vmem>>, vector<32x64xbf16>
    %cst_13 = arith.constant dense<0.000000e+00> : vector<128x64xf32>
    %32 = tpu.matmul %30, %31, %cst_13 {dimension_numbers = #tpu.dot_dimension_numbers<[1], [0], [0], [1], [0, 0, 1, 1], [], []>} : vector<128x32xbf16>, vector<32x64xbf16>, vector<128x64xf32> -> vector<128x64xf32>
    %c0_14 = arith.constant 0 : index
    %c0_15 = arith.constant 0 : index
    %33 = vector.load %arg5[%c0_14, %c0_15] : memref<1x64xf32, #tpu.memory_space<vmem>>, vector<1x64xf32>
    %34 = vector.broadcast %33 : vector<1x64xf32> to vector<128x64xf32>
    %35 = arith.addf %32, %34 : vector<128x64xf32>
    %cst_16 = arith.constant dense<0.000000e+00> : vector<64xf32>
    %36 = vector.multi_reduction <add>, %35, %cst_16 [0] : vector<128x64xf32> to vector<64xf32>
    %37 = vector.shape_cast %36 : vector<64xf32> to vector<1x64xf32>
    %cst_17 = arith.constant 1.280000e+02 : f32
    %38 = vector.broadcast %cst_17 : f32 to vector<1x64xf32>
    %39 = arith.divf %37, %38 : vector<1x64xf32>
    %40 = vector.broadcast %39 : vector<1x64xf32> to vector<128x64xf32>
    %41 = arith.subf %35, %40 : vector<128x64xf32>
    %42 = arith.mulf %41, %41 : vector<128x64xf32>
    %cst_18 = arith.constant dense<0.000000e+00> : vector<64xf32>
    %43 = vector.multi_reduction <add>, %42, %cst_18 [0] : vector<128x64xf32> to vector<64xf32>
    %44 = vector.shape_cast %43 : vector<64xf32> to vector<1x64xf32>
    %cst_19 = arith.constant 1.280000e+02 : f32
    %45 = vector.broadcast %cst_19 : f32 to vector<1x64xf32>
    %46 = arith.divf %44, %45 : vector<1x64xf32>
    %c0_20 = arith.constant 0 : index
    %c0_21 = arith.constant 0 : index
    %47 = vector.load %arg6[%c0_20, %c0_21] : memref<1x64xf32, #tpu.memory_space<vmem>>, vector<1x64xf32>
    %cst_22 = arith.constant 9.99999974E-6 : f32
    %48 = vector.broadcast %cst_22 : f32 to vector<1x64xf32>
    %49 = arith.addf %46, %48 : vector<1x64xf32>
    %50 = math.rsqrt %49 : vector<1x64xf32>
    %51 = arith.mulf %47, %50 : vector<1x64xf32>
    %52 = vector.broadcast %39 : vector<1x64xf32> to vector<128x64xf32>
    %53 = arith.subf %35, %52 : vector<128x64xf32>
    %54 = vector.broadcast %51 : vector<1x64xf32> to vector<128x64xf32>
    %55 = arith.mulf %53, %54 : vector<128x64xf32>
    %c0_23 = arith.constant 0 : index
    %c0_24 = arith.constant 0 : index
    %56 = vector.load %arg7[%c0_23, %c0_24] : memref<1x64xf32, #tpu.memory_space<vmem>>, vector<1x64xf32>
    %57 = vector.broadcast %56 : vector<1x64xf32> to vector<128x64xf32>
    %58 = arith.addf %55, %57 : vector<128x64xf32>
    %59 = vector.shape_cast %58 : vector<128x64xf32> to vector<2x64x64xf32>
    %60 = arith.addf %59, %1 : vector<2x64x64xf32>
    %c0_25 = arith.constant 0 : index
    %c0_26 = arith.constant 0 : index
    %c0_27 = arith.constant 0 : index
    %c0_28 = arith.constant 0 : index
    %61 = vector.load %arg8[%c0_25, %c0_26, %c0_27, %c0_28] : memref<1x2x64x64xf32, #tpu.memory_space<vmem>>, vector<1x2x64x64xf32>
    %62 = vector.shape_cast %61 : vector<1x2x64x64xf32> to vector<2x64x64xf32>
    %63 = vector.shape_cast %60 : vector<2x64x64xf32> to vector<1x2x64x64xf32>
    tpu.vector_store %arg8[%c0_25, %c0_26, %c0_27, %c0_28], %63 {strides = array<i32>} : memref<1x2x64x64xf32, #tpu.memory_space<vmem>>, vector<1x2x64x64xf32>,
    return
  }
  func.func @transform_0(%arg0: i32) -> (i32, i32, i32, i32) {
    %c0_i32 = arith.constant 0 : i32
    %c0_i32_0 = arith.constant 0 : i32
    %c0_i32_1 = arith.constant 0 : i32
    %c0_i32_2 = arith.constant 0 : i32
    return %arg0, %c0_i32, %c0_i32_0, %c0_i32_1 : i32, i32, i32, i32
  }
  func.func @transform_1(%arg0: i32) -> (i32, i32) {
    %c0_i32 = arith.constant 0 : i32
    %c0_i32_0 = arith.constant 0 : i32
    %c0_i32_1 = arith.constant 0 : i32
    return %c0_i32, %c0_i32_0 : i32, i32
  }
  func.func @transform_2(%arg0: i32) -> (i32, i32) {
    %c0_i32 = arith.constant 0 : i32
    %c0_i32_0 = arith.constant 0 : i32
    %c0_i32_1 = arith.constant 0 : i32
    return %c0_i32, %c0_i32_0 : i32, i32
  }
  func.func @transform_3(%arg0: i32) -> (i32, i32) {
    %c0_i32 = arith.constant 0 : i32
    %c0_i32_0 = arith.constant 0 : i32
    %c0_i32_1 = arith.constant 0 : i32
    return %c0_i32, %c0_i32_0 : i32, i32
  }
  func.func @transform_4(%arg0: i32) -> (i32, i32) {
    %c0_i32 = arith.constant 0 : i32
    %c0_i32_0 = arith.constant 0 : i32
    %c0_i32_1 = arith.constant 0 : i32
    return %c0_i32, %c0_i32_0 : i32, i32
  }
  func.func @transform_5(%arg0: i32) -> (i32, i32) {
    %c0_i32 = arith.constant 0 : i32
    %c0_i32_0 = arith.constant 0 : i32
    %c0_i32_1 = arith.constant 0 : i32
    return %c0_i32, %c0_i32_0 : i32, i32
  }
  func.func @transform_6(%arg0: i32) -> (i32, i32) {
    %c0_i32 = arith.constant 0 : i32
    %c0_i32_0 = arith.constant 0 : i32
    %c0_i32_1 = arith.constant 0 : i32
    return %c0_i32, %c0_i32_0 : i32, i32
  }
  func.func @transform_7(%arg0: i32) -> (i32, i32, i32, i32) {
    %c0_i32 = arith.constant 0 : i32
    %c0_i32_0 = arith.constant 0 : i32
    %c0_i32_1 = arith.constant 0 : i32
    %c0_i32_2 = arith.constant 0 : i32
    return %arg0, %c0_i32, %c0_i32_0, %c0_i32_1 : i32, i32, i32, i32
  }
}

</mosaic_0001>

<bundles_post_ra>
// kernel: nonlocal2d_forward.1
= control target key start
LH: loop header
LB: loop body
LE: loop exit
PB: predicated region body
PF: predicated region fallthrough
CT: control target
= control target key end

     0   :  { %s1803_s24 = smov 0   ;;  %s2233_s0 = inlined_call_operand.vmem [shape: f32[4,2,64,64], index: 0, kind: input, shape index: {}]   ;;  %s2234_s1 = inlined_call_operand.vmem [shape: bf16[64,96], index: 1, kind: input, shape index: {}]   ;;  %s2235_s2 = inlined_call_operand.vmem [shape: f32[1,96], index: 2, kind: input, shape index: {}]   ;;  %s2236_s3 = inlined_call_operand.vmem [shape: bf16[32,64], index: 3, kind: input, shape index: {}]   ;;  %s2237_s4 = inlined_call_operand.vmem [shape: f32[1,64], index: 4, kind: input, shape index: {}]   ;;  %s2238_s5 = inlined_call_operand.vmem [shape: f32[1,64], index: 5, kind: input, shape index: {}]   ;;  %s2239_s6 = inlined_call_operand.vmem [shape: f32[1,64], index: 6, kind: input, shape index: {}]   ;;  %s2240_s7 = inlined_call_operand.vmem [shape: f32[4,2,64,64], index: 7, kind: output, shape index: {}]  }
   0x1 LB: > { %s1427_s25 = sadd.s32 4294967295, %s1759_s24   ;;  %p1431_p0 = scmp.ge.s32.totalorder %s1759_s24, 1  ;;  %s1759_s24 = sphi %s1803_s24, %s17_s24  }
   0x2   : > { %p237_p1 = scmp.lt.s32.totalorder %s1759_s24, 5 }
   0x4   : > { %p238_p2 = pnand %p1431_p0, %p237_p1 }
   0x5   : > { %v1665_v0 = vld [vmem:[%s2234_s1] sm:$0xff] (!%p238_p2)   ;;  %p269_p3 = scmp.lt.s32.totalorder (!%p238_p2), %s1427_s25, 3  ;;  %v1666_v1 = vld [vmem:[%s2234_s1 + $0x8] sm:$0xff] (!%p238_p2)   ;;  %v1667_v2 = vld [vmem:[%s2234_s1 + $0x10] sm:$0xff] (!%p238_p2)   ;;  %vm343_vm0 = vcmask (!%p238_p2), 523264   ;;  %s1761_s17 = smov (!%p238_p2), 64  }
   0x6   : > { %241 = sbr.rel (%p238_p2) target bundleno = 1339 (0x53b), region = 48  ;;  %1535 = vmatprep.subr.bf16.mxu0 (!%p238_p2), %v1665_v0  ;;  %v1668_v6 = vld [vmem:[%s2234_s1 + $0x18] sm:$0xff] (!%p238_p2)   ;;  %v1436_v29 = vld [vmem:[%s2235_s2] ss:$0 sm:$0xff] (!%p238_p2)  ;;  %s1762_s18 = smov (!%p238_p2), 96   ;;  %vm493_vm1 = vcmask (!%p238_p2), 261120  }
   0x7   : > { %1536 = vmatpush3.bf16.msra.mxu0 (!%p238_p2), %v1665_v0 }
   0x8   : > { %1537 = vmatprep.subr.bf16.mxu0 (!%p238_p2), %v1666_v1 }
   0xb   : > { %1538 = vmatpush3.bf16.msra.mxu0 (!%p238_p2), %v1666_v1 }
   0xc   : > { %1539 = vmatprep.subr.bf16.mxu0 (!%p238_p2), %v1667_v2 }
   0xd   : > { %s2242_s25 = smov (!%p269_p3, %s1427_s25), 3 }
   0xe   : > { %s1479_s9 = sshll.u32 %s2242_s25, 7 }
   0xf   : > { %s1828_s12 = scalar_lea.vmem %s2233_s0, %s1479_s9  ;;  %1540 = vmatpush3.bf16.msra.mxu0 %v1667_v2  ;;  %s2180_s11 = scalar_lea.vmem %s2240_s7, %s1479_s9 }
  0x10   : > { %v280_v3 = vld [vmem:[%s1828_s12] sm:$0xff]  ;;  %v281_v4 = vld [vmem:[%s1828_s12 + $0x8] sm:$0xff]  ;;  %v282_v7 = vld [vmem:[%s1828_s12 + $0x10] sm:$0xff]  ;;  %1541 = vmatprep.subr.bf16.mxu0 %v1668_v6 }
  0x11   : > { %v296_v5 = vpack.c.bf16 %v281_v4, %v280_v3  ;;  %v283_v8 = vld [vmem:[%s1828_s12 + $0x18] sm:$0xff]  ;;  %v284_v9 = vld [vmem:[%s1828_s12 + $0x20] sm:$0xff]  ;;  %v285_v10 = vld [vmem:[%s1828_s12 + $0x28] sm:$0xff] }
  0x12   : > { %v297_v11 = vpack.c.bf16 %v283_v8, %v282_v7  ;;  %v298_v12 = vpack.c.bf16 %v285_v10, %v284_v9  ;;  %v286_v13 = vld [vmem:[%s1828_s12 + $0x30] sm:$0xff]  ;;  %v287_v14 = vld [vmem:[%s1828_s12 + $0x38] sm:$0xff]  ;;  %v288_v15 = vld [vmem:[%s1828_s12 + $0x40] sm:$0xff] }
  0x13   : > { %1543 = vmatprep.mubr.msk.bf16.mxu0 %vm343_vm0, %v296_v5  ;;  %1542 = vmatpush3.bf16.msra.mxu0 %v1668_v6  ;;  %v289_v16 = vld [vmem:[%s1828_s12 + $0x48] sm:$0xff]  ;;  %v299_v17 = vpack.c.bf16 %v287_v14, %v286_v13  ;;  %v290_v19 = vld [vmem:[%s1828_s12 + $0x50] sm:$0xff]  ;;  %v291_v20 = vld [vmem:[%s1828_s12 + $0x58] sm:$0xff] }
  0x14   : > { %v300_v18 = vpack.c.bf16 %v289_v16, %v288_v15  ;;  %v292_v21 = vld [vmem:[%s1828_s12 + $0x60] sm:$0xff]  ;;  %v293_v22 = vld [vmem:[%s1828_s12 + $0x68] sm:$0xff]  ;;  %v301_v23 = vpack.c.bf16 %v291_v20, %v290_v19  ;;  %v294_v25 = vld [vmem:[%s1828_s12 + $0x70] sm:$0xff] }
  0x15   : > { %v302_v24 = vpack.c.bf16 %v293_v22, %v292_v21  ;;  %v295_v26 = vld [vmem:[%s1828_s12 + $0x78] sm:$0xff] }
  0x16   : > { %1544 = vmatmul.mubr.msk.bf16.vlgmr.msra.gmra.mrb[0].mxu0 %vm343_vm0, %v297_v11  ;;  %v303_v27 = vpack.c.bf16 %v295_v26, %v294_v25 }
  0x17   : > { %1547 = vmatprep.mubr.msk.bf16.mxu0 %vm343_vm0, %v298_v12 }
  0x1e   : > { %1548 = vmatmul.mubr.msk.bf16.gmra.mrb[4].mxu0 %vm343_vm0, %v299_v17 }
  0x1f   : > { %1551 = vmatprep.mubr.msk.bf16.mxu0 %vm343_vm0, %v300_v18 }
  0x26   : > { %1552 = vmatmul.mubr.msk.bf16.gmra.mrb[8].mxu0 %vm343_vm0, %v301_v23 }
  0x27   : > { %1555 = vmatprep.mubr.msk.bf16.mxu0 %vm343_vm0, %v302_v24 }
  0x2e   : > { %1556 = vmatmul.mubr.msk.bf16.gmra.mrb[12].mxu0 %vm343_vm0, %v303_v27 }
  0xe9   : > { %v1545_v28 = vpop.f32.mrb[0].mxu0 }
  0xea   : > { %v402_v30 = vpop.f32.mrb[1].mxu0  ;;  %v411_v32 = vadd.f32 %v1545_v28, %v1436_v29 }
  0xeb   : > { %v1546_v31 = vpop.f32.mrb[2].mxu0  ;;  %v403_v35 = vadd.f32 %v1436_v29, %v402_v30 }
  0xec   : > { %v414_v33 = vadd.f32 %v1546_v31, %v1436_v29  ;;  %v405_v34 = vpop.f32.mrb[3].mxu0 }
  0xed   : > { %v406_v36 = vadd.f32 %v1436_v29, %v405_v34 }
  0xee   : > { %v1860_v37 = vpack.c.bf16 %v414_v33, %v411_v32 }
  0xef   : > { %v1862_v38 = vpack.c.bf16 %v406_v36, %v403_v35 }
  0xf1   : > { %v1549_v39 = vpop.f32.mrb[4].mxu0  ;;  %485 = vrot.lane.b32.xlu0 %v1862_v38, %s1761_s17 }
  0xf2   : > { %v427_v40 = vadd.f32 %v1549_v39, %v1436_v29  ;;  %v418_v41 = vpop.f32.mrb[5].mxu0 }
  0xf3   : > { %v419_v42 = vadd.f32 %v1436_v29, %v418_v41  ;;  %v1550_v43 = vpop.f32.mrb[6].mxu0 }
  0xf4   : > { %v430_v44 = vadd.f32 %v1550_v43, %v1436_v29  ;;  %v421_v45 = vpop.f32.mrb[7].mxu0 }
  0xf5   : > { %v422_v46 = vadd.f32 %v1436_v29, %v421_v45  ;;  %487 = vrot.lane.b32.xlu0 %v1860_v37, %s1761_s17 }
  0xf6   : > { %v1868_v47 = vpack.c.bf16 %v430_v44, %v427_v40 }
  0xf7   : > { %v1870_v48 = vpack.c.bf16 %v422_v46, %v419_v42 }
  0xf9   : > { %v1553_v49 = vpop.f32.mrb[8].mxu0  ;;  %489 = vrot.lane.b32.xlu1 %v1870_v48, %s1761_s17  ;;  %491 = vrot.lane.b32.xlu0 %v1868_v47, %s1761_s17 }
  0xfa   : > { %v443_v50 = vadd.f32 %v1553_v49, %v1436_v29  ;;  %v434_v51 = vpop.f32.mrb[9].mxu0 }
  0xfb   : > { %v435_v52 = vadd.f32 %v1436_v29, %v434_v51  ;;  %v1554_v53 = vpop.f32.mrb[10].mxu0 }
  0xfc   : > { %v446_v54 = vadd.f32 %v1554_v53, %v1436_v29  ;;  %v437_v55 = vpop.f32.mrb[11].mxu0 }
  0xfd   : > { %v438_v56 = vadd.f32 %v1436_v29, %v437_v55  ;;  %477 = vrot.lane.b32.xlu0 %v1862_v38, %s1762_s18 }
  0xfe   : > { %v1877_v57 = vpack.c.bf16 %v446_v54, %v443_v50 }
  0xff   : > { %v1879_v58 = vpack.c.bf16 %v438_v56, %v435_v52 }
 0x101   : > { %v1557_v59 = vpop.f32.mrb[12].mxu0  ;;  %595 = vrot.lane.b32.xlu1 %v1879_v58, %s1761_s17 }
 0x102   : > { %v459_v60 = vadd.f32 %v1557_v59, %v1436_v29  ;;  %v450_v61 = vpop.f32.mrb[13].mxu0 }
 0x103   : > { %v451_v62 = vadd.f32 %v1436_v29, %v450_v61  ;;  %v1558_v63 = vpop.f32.mrb[14].mxu0 }
 0x104   : > { %v462_v0 = vadd.f32 %v1558_v63, %v1436_v29  ;;  %v453_v1 = vpop.f32.mrb[15].mxu0 }
 0x105   : > { %v454_v2 = vadd.f32 %v1436_v29, %v453_v1  ;;  %597 = vrot.lane.b32.xlu1 %v1877_v57, %s1761_s17 }
 0x106   : > { %v1885_v3 = vpack.c.bf16 %v462_v0, %v459_v60 }
 0x107   : > { %v1887_v4 = vpack.c.bf16 %v454_v2, %v451_v62 }
 0x109   : > { %479 = vrot.lane.b32.xlu1 %v1860_v37, %s1762_s18  ;;  %599 = vrot.lane.b32.xlu0 %v1887_v4, %s1761_s17 }
 0x10d   : > { %481 = vrot.lane.b32.xlu1 %v1870_v48, %s1762_s18  ;;  %483 = vrot.lane.b32.xlu0 %v1868_v47, %s1762_s18 }
 0x111   : > { %601 = vrot.lane.b32.xlu1 %v1885_v3, %s1761_s17  ;;  %587 = vrot.lane.b32.xlu0 %v1879_v58, %s1762_s18 }
 0x115   : > { %589 = vrot.lane.b32.xlu1 %v1877_v57, %s1762_s18  ;;  %591 = vrot.lane.b32.xlu0 %v1887_v4, %s1762_s18 }
 0x119   : > { %593 = vrot.lane.b32.xlu1 %v1885_v3, %s1762_s18 }
 0x163   : > { %v486_v5 = vpop.permute.xlu0 %485 }
 0x164   : > { %1647 = vmatprep.subr.msk.bf16.mxu1 %vm493_vm1, %v486_v5  ;;  %v507_v6 = vsel %vm493_vm1, %v486_v5, 0 }
 0x165   : > { %1560 = vmatpush3.bf16.xpose.msra.mxu1 %v507_v6 }
 0x167   : > { %v488_v7 = vpop.permute.xlu0 %487 }
 0x168   : > { %1648 = vmatprep.subr.msk.bf16.mxu1 %vm493_vm1, %v488_v7  ;;  %v510_v9 = vsel %vm493_vm1, %v488_v7, 0 }
 0x16b   : > { %v492_v8 = vpop.permute.xlu0 %491  ;;  %v490_v10 = vpop.permute.xlu1 %489 }
 0x16c   : > { %v513_v14 = vsel %vm493_vm1, %v490_v10, 0  ;;  %v516_v19 = vsel %vm493_vm1, %v492_v8, 0 }
 0x16d   : > { %1562 = vmatpush3.bf16.xpose.msra.mxu1 %v510_v9 }
 0x16e   : > { %1649 = vmatprep.subr.msk.bf16.mxu1 %vm493_vm1, %v490_v10 }
 0x16f   : > { %v478_v11 = vpop.permute.xlu0 %477 }
 0x170   : > { %1567 = vmatprep.mubr.msk.bf16.mxu1 %vm493_vm1, %v478_v11 }
 0x173   : > { %v596_v12 = vpop.permute.xlu1 %595 }
 0x174   : > { %v616_v13 = vsel %vm493_vm1, %v596_v12, 0  ;;  %1651 = vmatprep.subr.msk.bf16.mxu0 %vm493_vm1, %v596_v12 }
 0x175   : > { %1564 = vmatpush3.bf16.xpose.msra.mxu1 %v513_v14  ;;  %1576 = vmatpush3.bf16.xpose.msra.mxu0 %v616_v13 }
 0x176   : > { %1650 = vmatprep.subr.msk.bf16.mxu1 %vm493_vm1, %v492_v8 }
 0x177   : > { %v598_v15 = vpop.permute.xlu1 %597 }
 0x178   : > { %1652 = vmatprep.subr.msk.bf16.mxu0 %vm493_vm1, %v598_v15  ;;  %v619_v18 = vsel %vm493_vm1, %v598_v15, 0 }
 0x17b   : > { %v480_v16 = vpop.permute.xlu1 %479  ;;  %v600_v17 = vpop.permute.xlu0 %599 }
 0x17c   : > { %v622_v22 = vsel %vm493_vm1, %v600_v17, 0 }
 0x17d   : > { %1566 = vmatpush3.bf16.xpose.msra.mxu1 %v516_v19  ;;  %1578 = vmatpush3.bf16.xpose.msra.mxu0 %v619_v18 }
 0x17e   : > { %1591 = vmatprep.subr.bf16.mxu1 %v1862_v38  ;;  %1653 = vmatprep.subr.msk.bf16.mxu0 %vm493_vm1, %v600_v17 }
 0x17f   : > { %v482_v20 = vpop.permute.xlu1 %481  ;;  %v484_v21 = vpop.permute.xlu0 %483 }
 0x183   : > { %v588_v23 = vpop.permute.xlu0 %587  ;;  %v602_v24 = vpop.permute.xlu1 %601 }
 0x184   : > { %1568 = vmatmul.mubr.msk.bf16.vlgmr.msra.gmra.mrb[0].mxu1 %vm493_vm1, %v480_v16  ;;  %1583 = vmatprep.mubr.msk.bf16.mxu0 %vm493_vm1, %v588_v23  ;;  %v625_v25 = vsel %vm493_vm1, %v602_v24, 0 }
 0x185   : > { %1571 = vmatprep.mubr.msk.bf16.mxu1 %vm493_vm1, %v482_v20  ;;  %1580 = vmatpush3.bf16.xpose.msra.mxu0 %v622_v22 }
 0x186   : > { %1592 = vmatpush3.bf16.msra.mxu1 %v1862_v38  ;;  %1654 = vmatprep.subr.msk.bf16.mxu0 %vm493_vm1, %v602_v24 }
 0x187   : > { %1593 = vmatprep.subr.bf16.mxu1 %v1860_v37  ;;  %v590_v26 = vpop.permute.xlu1 %589  ;;  %v592_v27 = vpop.permute.xlu0 %591 }
 0x18a   : > { %1594 = vmatpush3.bf16.msra.mxu1 %v1860_v37 }
 0x18b   : > { %1595 = vmatprep.subr.bf16.mxu1 %v1870_v48  ;;  %v594_v28 = vpop.permute.xlu1 %593 }
 0x18c   : > { %1572 = vmatmul.mubr.msk.bf16.gmra.mrb[4].mxu1 %vm493_vm1, %v484_v21 }
 0x18d   : > { %1582 = vmatpush3.bf16.xpose.msra.mxu0 %v625_v25 }
 0x18e   : > { %1596 = vmatpush3.bf16.msra.mxu1 %v1870_v48  ;;  %1607 = vmatprep.subr.bf16.mxu0 %v1879_v58 }
 0x18f   : > { %1597 = vmatprep.subr.bf16.mxu1 %v1868_v47 }
 0x192   : > { %1598 = vmatpush3.bf16.msra.mxu1 %v1868_v47 }
 0x194   : > { %1584 = vmatmul.mubr.msk.bf16.vlgmr.msra.gmra.mrb[16].mxu0 %vm493_vm1, %v590_v26 }
 0x195   : > { %1587 = vmatprep.mubr.msk.bf16.mxu0 %vm493_vm1, %v592_v27  ;;  %1608 = vmatpush3.bf16.msra.mxu0 %v1879_v58 }
 0x196   : > { %1609 = vmatprep.subr.bf16.mxu0 %v1877_v57 }
 0x199   : > { %1610 = vmatpush3.bf16.msra.mxu0 %v1877_v57 }
 0x19a   : > { %1611 = vmatprep.subr.bf16.mxu0 %v1887_v4 }
 0x19c   : > { %1588 = vmatmul.mubr.msk.bf16.gmra.mrb[20].mxu0 %vm493_vm1, %v594_v28 }
 0x19d   : > { %1612 = vmatpush3.bf16.msra.mxu0 %v1887_v4 }
 0x19e   : > { %1613 = vmatprep.subr.bf16.mxu0 %v1885_v3 }
 0x1a1   : > { %1614 = vmatpush3.bf16.msra.mxu0 %v1885_v3 }
 0x257   : > { %v1569_v29 = vpop.f32.mrb[0].mxu1 }
 0x258   : > { %v552_v30 = vpop.f32.mrb[1].mxu1  ;;  %v698_v35 = vsel %vm343_vm0, %v1569_v29, -inf }
 0x259   : > { %v1940_v31 = vpop.f32.mrb[2].mxu1  ;;  %v692_v32 = vsel %vm343_vm0, %v552_v30, -inf }
 0x25a   : > { %693 = vmax.xlane.f32.xlu0 %v692_v32  ;;  %v555_v33 = vpop.f32.mrb[3].mxu1  ;;  %v701_v39 = vsel %vm343_vm0, %v1940_v31, -inf }
 0x25b   : > { %v695_v34 = vsel %vm343_vm0, %v555_v33, -inf }
 0x25c   : > { %696 = vmax.xlane.f32.xlu1 %v695_v34 }
 0x25e   : > { %699 = vmax.xlane.f32.xlu0 %v698_v35 }
 0x25f   : > { %v1945_v36 = vpop.f32.mrb[4].mxu1 }
 0x260   : > { %v568_v37 = vpop.f32.mrb[5].mxu1  ;;  %v710_v42 = vsel %vm343_vm0, %v1945_v36, -inf }
 0x261   : > { %v1947_v38 = vpop.f32.mrb[6].mxu1  ;;  %v704_v40 = vsel %vm343_vm0, %v568_v37, -inf }
 0x262   : > { %702 = vmax.xlane.f32.xlu0 %v701_v39  ;;  %705 = vmax.xlane.f32.xlu1 %v704_v40  ;;  %v571_v41 = vpop.f32.mrb[7].mxu1  ;;  %v713_v47 = vsel %vm343_vm0, %v1947_v38, -inf }
 0x263   : > { %v707_v43 = vsel %vm343_vm0, %v571_v41, -inf }
 0x266   : > { %711 = vmax.xlane.f32.xlu1 %v710_v42  ;;  %708 = vmax.xlane.f32.xlu0 %v707_v43 }
 0x267   : > { %v1955_v44 = vpop.f32.mrb[16].mxu0 }
 0x268   : > { %v1957_v45 = vpop.f32.mrb[17].mxu0  ;;  %v722_v50 = vsel %vm343_vm0, %v1955_v44, -inf }
 0x269   : > { %v1959_v46 = vpop.f32.mrb[18].mxu0  ;;  %v716_v48 = vsel %vm343_vm0, %v1957_v45, -inf }
 0x26a   : > { %714 = vmax.xlane.f32.xlu0 %v713_v47  ;;  %717 = vmax.xlane.f32.xlu1 %v716_v48  ;;  %v1965_v49 = vpop.f32.mrb[19].mxu0  ;;  %v725_v55 = vsel %vm343_vm0, %v1959_v46, -inf }
 0x26b   : > { %v719_v51 = vsel %vm343_vm0, %v1965_v49, -inf }
 0x26e   : > { %723 = vmax.xlane.f32.xlu1 %v722_v50  ;;  %720 = vmax.xlane.f32.xlu0 %v719_v51 }
 0x26f   : > { %v1971_v52 = vpop.f32.mrb[20].mxu0 }
 0x270   : > { %v1973_v53 = vpop.f32.mrb[21].mxu0  ;;  %v734_v58 = vsel %vm343_vm0, %v1971_v52, -inf }
 0x271   : > { %v1975_v54 = vpop.f32.mrb[22].mxu0  ;;  %v728_v56 = vsel %vm343_vm0, %v1973_v53, -inf }
 0x272   : > { %726 = vmax.xlane.f32.xlu0 %v725_v55  ;;  %729 = vmax.xlane.f32.xlu1 %v728_v56  ;;  %v1981_v57 = vpop.f32.mrb[23].mxu0  ;;  %v737_v60 = vsel %vm343_vm0, %v1975_v54, -inf }
 0x273   : > { %v731_v59 = vsel %vm343_vm0, %v1981_v57, -inf }
 0x276   : > { %735 = vmax.xlane.f32.xlu1 %v734_v58  ;;  %732 = vmax.xlane.f32.xlu0 %v731_v59 }
 0x27a   : > { %738 = vmax.xlane.f32.xlu0 %v737_v60 }
 0x2e7   : > { %v694_v61 = vpop.xlane.xlu0 %693 }
 0x2e8   : > { %v740_v62 = vsub.f32 %v552_v30, %v694_v61 }
 0x2e9   : > { %v697_v63 = vpop.xlane.xlu1 %696 }
 0x2ea   : > { %v756_v0 = vmul.f32 1.442695, %v740_v62  ;;  %v741_v1 = vsub.f32 %v555_v33, %v697_v63 }
 0x2eb   : > { %v700_v2 = vpop.xlane.xlu0 %699 }
 0x2ec   : > { %1671 = vpow2.f32 %v756_v0  ;;  %v758_v3 = vmul.f32 1.442695, %v741_v1  ;;  %v742_v4 = vsub.f32 %v1569_v29, %v700_v2 }
 0x2ee   : > { %1673 = vpow2.f32 %v758_v3  ;;  %v760_v5 = vmul.f32 1.442695, %v742_v4 }
 0x2ef   : > { %v706_v6 = vpop.xlane.xlu1 %705  ;;  %v703_v7 = vpop.xlane.xlu0 %702 }
 0x2f0   : > { %1675 = vpow2.f32 %v760_v5  ;;  %v744_v8 = vsub.f32 %v568_v37, %v706_v6  ;;  %v743_v9 = vsub.f32 %v1940_v31, %v703_v7 }
 0x2f2   : > { %v764_v10 = vmul.f32 1.442695, %v744_v8  ;;  %v762_v11 = vmul.f32 1.442695, %v743_v9 }
 0x2f3   : > { %v712_v12 = vpop.xlane.xlu1 %711  ;;  %v709_v13 = vpop.xlane.xlu0 %708 }
 0x2f4   : > { %1677 = vpow2.f32 %v764_v10  ;;  %v746_v14 = vsub.f32 %v1945_v36, %v712_v12  ;;  %v745_v15 = vsub.f32 %v571_v41, %v709_v13 }
 0x2f5   : > { %1679 = vpow2.f32 %v762_v11 }
 0x2f6   : > { %v1672_v16 = vpop.eup %1671  ;;  %v768_v17 = vmul.f32 1.442695, %v746_v14  ;;  %v766_v18 = vmul.f32 1.442695, %v745_v15 }
 0x2f7   : > { %v718_v19 = vpop.xlane.xlu1 %717  ;;  %v715_v20 = vpop.xlane.xlu0 %714  ;;  %v788_v21 = vsel %vm343_vm0, %v1672_v16, 0.0 }
 0x2f8   : > { %v1674_v22 = vpop.eup %1673  ;;  %1681 = vpow2.f32 %v768_v17  ;;  %v748_v23 = vsub.f32 %v1957_v45, %v718_v19  ;;  %v747_v24 = vsub.f32 %v1947_v38, %v715_v20  ;;  %789 = vadd.xlane.f32.xlu1 %v788_v21  ;;  %v1669_v21 = vld [vmem:[%s2236_s3] sm:$0xff]  }
 0x2f9   : > { %1683 = vpow2.f32 %v766_v18  ;;  %v791_v25 = vsel %vm343_vm0, %v1674_v22, 0.0  ;;  %v836_v26 = vpack.c.bf16 %v1674_v22, %v1672_v16  ;;  %1623 = vmatprep.subr.bf16.mxu0 %v1669_v21  ;;  %1643 = vmatprep.subr.bf16.mxu1 %v1669_v21  ;;  %v1670_v22 = vld [vmem:[%s2236_s3 + $0x8] sm:$0xff]  }
 0x2fa   : > { %v1676_v27 = vpop.eup %1675  ;;  %v772_v28 = vmul.f32 1.442695, %v748_v23  ;;  %v770_v29 = vmul.f32 1.442695, %v747_v24  ;;  %792 = vadd.xlane.f32.xlu0 %v791_v25 }
 0x2fb   : > { %v724_v30 = vpop.xlane.xlu1 %723  ;;  %1599 = vmatprep.mubr.msk.bf16.mxu1 %vm343_vm0, %v836_v26  ;;  %v721_v31 = vpop.xlane.xlu0 %720  ;;  %v794_v32 = vsel %vm343_vm0, %v1676_v27, 0.0 }
 0x2fc   : > { %1685 = vpow2.f32 %v772_v28  ;;  %v750_v33 = vsub.f32 %v1955_v44, %v724_v30  ;;  %v749_v34 = vsub.f32 %v1965_v49, %v721_v31  ;;  %795 = vadd.xlane.f32.xlu1 %v794_v32 }
 0x2fd   : > { %1687 = vpow2.f32 %v770_v29 }
 0x2fe   : > { %v1678_v35 = vpop.eup %1677  ;;  %v776_v36 = vmul.f32 1.442695, %v750_v33  ;;  %v774_v37 = vmul.f32 1.442695, %v749_v34 }
 0x2ff   : > { %v1680_v38 = vpop.eup %1679  ;;  %v730_v39 = vpop.xlane.xlu1 %729  ;;  %v800_v41 = vsel %vm343_vm0, %v1678_v35, 0.0 }
 0x300   : > { %v727_v40 = vpop.xlane.xlu0 %726  ;;  %v837_v42 = vpack.c.bf16 %v1680_v38, %v1676_v27  ;;  %1689 = vpow2.f32 %v776_v36  ;;  %v752_v43 = vsub.f32 %v1973_v53, %v730_v39  ;;  %801 = vadd.xlane.f32.xlu1 %v800_v41  ;;  %v797_v44 = vsel %vm343_vm0, %v1680_v38, 0.0 }
 0x301   : > { %v751_v45 = vsub.f32 %v1959_v46, %v727_v40  ;;  %1691 = vpow2.f32 %v774_v37  ;;  %798 = vadd.xlane.f32.xlu0 %v797_v44 }
 0x302   : > { %v1682_v47 = vpop.eup %1681  ;;  %v780_v48 = vmul.f32 1.442695, %v752_v43  ;;  %1600 = vmatmul.mubr.msk.bf16.vlgmr.msra.gmra.mrb[8].mxu1 %vm343_vm0, %v837_v42 }
 0x303   : > { %v778_v49 = vmul.f32 1.442695, %v751_v45  ;;  %v1684_v50 = vpop.eup %1683  ;;  %v736_v51 = vpop.xlane.xlu1 %735  ;;  %v806_v56 = vsel %vm343_vm0, %v1682_v47, 0.0  ;;  %1645 = vmatpush3.bf16.msra.mxu1 %v1669_v21 }
 0x304   : > { %v733_v55 = vpop.xlane.xlu0 %732  ;;  %1693 = vpow2.f32 %v780_v48  ;;  %v754_v53 = vsub.f32 %v1971_v52, %v736_v51  ;;  %807 = vadd.xlane.f32.xlu1 %v806_v56  ;;  %v803_v58 = vsel %vm343_vm0, %v1684_v50, 0.0  ;;  %v838_v59 = vpack.c.bf16 %v1684_v50, %v1678_v35  ;;  %1644 = vmatprep.subr.bf16.mxu1 %v1670_v22 }
 0x305   : > { %v753_v46 = vsub.f32 %v1981_v57, %v733_v55  ;;  %1695 = vpow2.f32 %v778_v49  ;;  %804 = vadd.xlane.f32.xlu0 %v803_v58 }
 0x306   : > { %v1686_v60 = vpop.eup %1685  ;;  %v784_v61 = vmul.f32 1.442695, %v754_v53  ;;  %1603 = vmatprep.mubr.msk.bf16.mxu1 %vm343_vm0, %v838_v59 }
 0x307   : > { %v782_v62 = vmul.f32 1.442695, %v753_v46  ;;  %v1688_v63 = vpop.eup %1687  ;;  %v812_v1 = vsel %vm343_vm0, %v1686_v60, 0.0  ;;  %1646 = vmatpush3.bf16.msra.mxu1 %v1670_v22 }
 0x308   : > { %v739_v0 = vpop.xlane.xlu0 %738  ;;  %1697 = vpow2.f32 %v784_v61  ;;  %813 = vadd.xlane.f32.xlu1 %v812_v1  ;;  %v809_v57 = vsel %vm343_vm0, %v1688_v63, 0.0  ;;  %v839_v2 = vpack.c.bf16 %v1688_v63, %v1682_v47 }
 0x309   : > { %v755_v52 = vsub.f32 %v1975_v54, %v739_v0  ;;  %1699 = vpow2.f32 %v782_v62  ;;  %810 = vadd.xlane.f32.xlu0 %v809_v57 }
 0x30a   : > { %v1690_v3 = vpop.eup %1689  ;;  %1604 = vmatmul.mubr.msk.bf16.gmra.mrb[12].mxu1 %vm343_vm0, %v839_v2 }
 0x30b   : > { %v786_v4 = vmul.f32 1.442695, %v755_v52  ;;  %v1692_v5 = vpop.eup %1691  ;;  %v818_v6 = vsel %vm343_vm0, %v1690_v3, 0.0 }
 0x30c   : > { %819 = vadd.xlane.f32.xlu1 %v818_v6  ;;  %v815_v7 = vsel %vm343_vm0, %v1692_v5, 0.0  ;;  %v840_v8 = vpack.c.bf16 %v1692_v5, %v1686_v60 }
 0x30d   : > { %1701 = vpow2.f32 %v786_v4  ;;  %816 = vadd.xlane.f32.xlu0 %v815_v7 }
 0x30e   : > { %v1694_v9 = vpop.eup %1693  ;;  %1615 = vmatprep.mubr.msk.bf16.mxu0 %vm343_vm0, %v840_v8 }
 0x30f   : > { %v1696_v54 = vpop.eup %1695  ;;  %v824_v10 = vsel %vm343_vm0, %v1694_v9, 0.0 }
 0x310   : > { %v841_v11 = vpack.c.bf16 %v1696_v54, %v1690_v3  ;;  %825 = vadd.xlane.f32.xlu1 %v824_v10  ;;  %v821_v12 = vsel %vm343_vm0, %v1696_v54, 0.0 }
 0x311   : > { %822 = vadd.xlane.f32.xlu0 %v821_v12 }
 0x312   : > { %v1698_v13 = vpop.eup %1697  ;;  %1616 = vmatmul.mubr.msk.bf16.vlgmr.msra.gmra.mrb[24].mxu0 %vm343_vm0, %v841_v11 }
 0x313   : > { %v1700_v14 = vpop.eup %1699  ;;  %v830_v15 = vsel %vm343_vm0, %v1698_v13, 0.0  ;;  %1624 = vmatpush3.bf16.msra.mxu0 %v1669_v21 }
 0x314   : > { %831 = vadd.xlane.f32.xlu1 %v830_v15  ;;  %v827_v16 = vsel %vm343_vm0, %v1700_v14, 0.0  ;;  %v842_v17 = vpack.c.bf16 %v1700_v14, %v1694_v9  ;;  %1625 = vmatprep.subr.bf16.mxu0 %v1670_v22 }
 0x315   : > { %828 = vadd.xlane.f32.xlu0 %v827_v16 }
 0x316   : > { %1619 = vmatprep.mubr.msk.bf16.mxu0 %vm343_vm0, %v842_v17 }
 0x317   : > { %v1702_v18 = vpop.eup %1701  ;;  %1626 = vmatpush3.bf16.msra.mxu0 %v1670_v22 }
 0x318   : > { %v833_v19 = vsel %vm343_vm0, %v1702_v18, 0.0  ;;  %v843_v20 = vpack.c.bf16 %v1702_v18, %v1698_v13 }
 0x319   : > { %834 = vadd.xlane.f32.xlu0 %v833_v19 }
 0x31a   : > { %1620 = vmatmul.mubr.msk.bf16.gmra.mrb[28].mxu0 %vm343_vm0, %v843_v20 }
 0x385   : > { %v790_v23 = vpop.xlane.xlu1 %789 }
 0x386   : > { %1703 = vrcp.f32 %v790_v23 }
 0x387   : > { %v793_v24 = vpop.xlane.xlu0 %792 }
 0x389   : > { %v796_v25 = vpop.xlane.xlu1 %795 }
 0x38a   : > { %1705 = vrcp.f32 %v796_v25 }
 0x38d   : > { %v802_v27 = vpop.xlane.xlu1 %801 }
 0x38e   : > { %v799_v26 = vpop.xlane.xlu0 %798 }
 0x38f   : > { %1707 = vrcp.f32 %v799_v26 }
 0x390   : > { %1709 = vrcp.f32 %v793_v24  ;;  %v1704_v33 = vpop.eup %1703 }
 0x391   : > { %v808_v29 = vpop.xlane.xlu1 %807  ;;  %1711 = vrcp.f32 %v802_v27 }
 0x392   : > { %v805_v28 = vpop.xlane.xlu0 %804  ;;  %1713 = vrcp.f32 %v808_v29 }
 0x394   : > { %v1706_v36 = vpop.eup %1705 }
 0x395   : > { %v814_v31 = vpop.xlane.xlu1 %813 }
 0x396   : > { %v811_v30 = vpop.xlane.xlu0 %810 }
 0x397   : > { %1715 = vrcp.f32 %v811_v30 }
 0x398   : > { %1717 = vrcp.f32 %v805_v28 }
 0x399   : > { %v820_v34 = vpop.xlane.xlu1 %819  ;;  %v1708_v39 = vpop.eup %1707  ;;  %1719 = vrcp.f32 %v814_v31  ;;  %v1465_v31 = vld [vmem:[%s2237_s4] ss:$0 sm:$0xff] }
 0x39a   : > { %v817_v32 = vpop.xlane.xlu0 %816  ;;  %v1710_v41 = vpop.eup %1709  ;;  %1721 = vrcp.f32 %v820_v34 }
 0x39b   : > { %v1712_v55 = vpop.eup %1711 }
 0x39c   : > { %v1714_v53 = vpop.eup %1713 }
 0x39d   : > { %v826_v49 = vpop.xlane.xlu1 %825 }
 0x39e   : > { %v823_v37 = vpop.xlane.xlu0 %822 }
 0x39f   : > { %1723 = vrcp.f32 %v823_v37 }
 0x3a0   : > { %1725 = vrcp.f32 %v817_v32 }
 0x3a1   : > { %v1716_v58 = vpop.eup %1715  ;;  %v832_v0 = vpop.xlane.xlu1 %831  ;;  %1727 = vrcp.f32 %v826_v49 }
 0x3a2   : > { %v829_v51 = vpop.xlane.xlu0 %828  ;;  %v1718_v60 = vpop.eup %1717  ;;  %1729 = vrcp.f32 %v832_v0 }
 0x3a3   : > { %v1720_v4 = vpop.eup %1719 }
 0x3a4   : > { %v1722_v6 = vpop.eup %1721 }
 0x3a6   : > { %v835_v57 = vpop.xlane.xlu0 %834 }
 0x3a7   : > { %1731 = vrcp.f32 %v835_v57 }
 0x3a8   : > { %1733 = vrcp.f32 %v829_v51 }
 0x3a9   : > { %v1724_v8 = vpop.eup %1723 }
 0x3aa   : > { %v1726_v54 = vpop.eup %1725 }
 0x3ab   : > { %v1728_v17 = vpop.eup %1727 }
 0x3ac   : > { %v1730_v19 = vpop.eup %1729 }
 0x3b1   : > { %v1732_v21 = vpop.eup %1731 }
 0x3b2   : > { %v1734_v23 = vpop.eup %1733 }
 0x3d5   : > { %v1601_v35 = vpop.f32.mrb[8].mxu1 }
 0x3d6   : > { %v890_v38 = vpop.f32.mrb[9].mxu1  ;;  %v1016_v42 = vmul.f32 %v1706_v36, %v1601_v35 }
 0x3d7   : > { %v1602_v40 = vpop.f32.mrb[10].mxu1  ;;  %v1014_v44 = vmul.f32 %v1704_v33, %v890_v38 }
 0x3d8   : > { %v1017_v43 = vmul.f32 %v1708_v39, %v1602_v40  ;;  %v893_v45 = vpop.f32.mrb[11].mxu1 }
 0x3d9   : > { %v1015_v47 = vmul.f32 %v1710_v41, %v893_v45 }
 0x3da   : > { %v1031_v48 = vpack.c.bf16 %v1017_v43, %v1016_v42 }
 0x3db   : > { %v1030_v50 = vpack.c.bf16 %v1015_v47, %v1014_v44 }
 0x3dd   : > { %v1605_v56 = vpop.f32.mrb[12].mxu1  ;;  %1627 = vmatprep.mubr.msk.bf16.mxu0 %vm493_vm1, %v1030_v50 }
 0x3de   : > { %v906_v46 = vpop.f32.mrb[13].mxu1  ;;  %1628 = vmatmul.mubr.msk.bf16.vlgmr.msra.gmra.mrb[32].mxu0 %vm493_vm1, %v1031_v48  ;;  %v1020_v61 = vmul.f32 %v1714_v53, %v1605_v56 }
 0x3df   : > { %v1606_v59 = vpop.f32.mrb[14].mxu1  ;;  %v1018_v1 = vmul.f32 %v1712_v55, %v906_v46 }
 0x3e0   : > { %v1021_v62 = vmul.f32 %v1716_v58, %v1606_v59  ;;  %v909_v63 = vpop.f32.mrb[15].mxu1 }
 0x3e1   : > { %v1019_v52 = vmul.f32 %v1718_v60, %v909_v63 }
 0x3e2   : > { %v1033_v2 = vpack.c.bf16 %v1021_v62, %v1020_v61 }
 0x3e3   : > { %v1032_v3 = vpack.c.bf16 %v1019_v52, %v1018_v1 }
 0x3e5   : > { %v1617_v5 = vpop.f32.mrb[24].mxu0  ;;  %1631 = vmatprep.mubr.msk.bf16.mxu1 %vm493_vm1, %v1032_v3 }
 0x3e6   : > { %v967_v7 = vpop.f32.mrb[25].mxu0  ;;  %1632 = vmatmul.mubr.msk.bf16.vlgmr.msra.gmra.mrb[16].mxu1 %vm493_vm1, %v1033_v2  ;;  %v1024_v10 = vmul.f32 %v1722_v6, %v1617_v5 }
 0x3e7   : > { %v1618_v9 = vpop.f32.mrb[26].mxu0  ;;  %v1022_v13 = vmul.f32 %v1720_v4, %v967_v7 }
 0x3e8   : > { %v1025_v11 = vmul.f32 %v1724_v8, %v1618_v9  ;;  %v970_v12 = vpop.f32.mrb[27].mxu0 }
 0x3e9   : > { %v1023_v14 = vmul.f32 %v1726_v54, %v970_v12 }
 0x3ea   : > { %v1035_v15 = vpack.c.bf16 %v1025_v11, %v1024_v10 }
 0x3eb   : > { %v1034_v16 = vpack.c.bf16 %v1023_v14, %v1022_v13 }
 0x3ed   : > { %v1621_v18 = vpop.f32.mrb[28].mxu0  ;;  %1635 = vmatprep.mubr.msk.bf16.mxu1 %vm493_vm1, %v1034_v16 }
 0x3ee   : > { %v983_v20 = vpop.f32.mrb[29].mxu0  ;;  %1636 = vmatmul.mubr.msk.bf16.gmra.mrb[20].mxu1 %vm493_vm1, %v1035_v15  ;;  %v1028_v24 = vmul.f32 %v1730_v19, %v1621_v18 }
 0x3ef   : > { %v1622_v22 = vpop.f32.mrb[30].mxu0  ;;  %v1026_v27 = vmul.f32 %v1728_v17, %v983_v20 }
 0x3f0   : > { %v1029_v25 = vmul.f32 %v1732_v21, %v1622_v22  ;;  %v986_v26 = vpop.f32.mrb[31].mxu0 }
 0x3f1   : > { %v1027_v28 = vmul.f32 %v1734_v23, %v986_v26 }
 0x3f2   : > { %v1037_v29 = vpack.c.bf16 %v1029_v25, %v1028_v24 }
 0x3f3   : > { %v1036_v30 = vpack.c.bf16 %v1027_v28, %v1026_v27 }
 0x3f5   : > { %1639 = vmatprep.mubr.msk.bf16.mxu1 %vm493_vm1, %v1036_v30 }
 0x3f6   : > { %1640 = vmatmul.mubr.msk.bf16.gmra.mrb[24].mxu1 %vm493_vm1, %v1037_v29 }
 0x4b1   : > { %v1629_v32 = vpop.f32.mrb[32].mxu0 }
 0x4b2   : > { %v1119_v33 = vpop.f32.mrb[33].mxu0  ;;  %v2043_v37 = vadd.f32 %v1629_v32, %v1465_v31 }
 0x4b3   : > { %v2041_v34 = vadd.f32 %v1465_v31, %v1119_v33  ;;  %v1630_v35 = vpop.f32.mrb[34].mxu0 }
 0x4b4   : > { %v1122_v36 = vpop.f32.mrb[35].mxu0  ;;  %v2049_v40 = vadd.f32 %v1630_v35, %v1465_v31  ;;  %v1185_v43 = vsel %vm343_vm0, %v2043_v37, 0.0 }
 0x4b5   : > { %v2045_v38 = vadd.f32 %v1465_v31, %v1122_v36  ;;  %v1182_v39 = vsel %vm343_vm0, %v2041_v34, 0.0 }
 0x4b6   : > { %v1187_v48 = vsel %vm343_vm0, %v2049_v40, 0.0 }
 0x4b7   : > { %v1183_v41 = vsel %vm343_vm0, %v2045_v38, 0.0 }
 0x4b8   : > { %v1184_v42 = vadd.f32 %v1183_v41, %v1182_v39 }
 0x4b9   : > { %v1633_v45 = vpop.f32.mrb[16].mxu1 }
 0x4ba   : > { %v1186_v44 = vadd.f32 %v1185_v43, %v1184_v42  ;;  %v1135_v47 = vpop.f32.mrb[17].mxu1  ;;  %v1144_v56 = vadd.f32 %v1633_v45, %v1465_v31 }
 0x4bb   : > { %v1136_v49 = vadd.f32 %v1465_v31, %v1135_v47  ;;  %v1634_v50 = vpop.f32.mrb[18].mxu1 }
 0x4bc   : > { %v1188_v51 = vadd.f32 %v1187_v48, %v1186_v44  ;;  %v1138_v55 = vpop.f32.mrb[19].mxu1  ;;  %v1147_v59 = vadd.f32 %v1634_v50, %v1465_v31  ;;  %v1193_v62 = vsel %vm343_vm0, %v1144_v56, 0.0 }
 0x4bd   : > { %v1189_v53 = vsel %vm343_vm0, %v1136_v49, 0.0  ;;  %v1139_v46 = vadd.f32 %v1465_v31, %v1138_v55 }
 0x4be   : > { %v1190_v58 = vadd.f32 %v1189_v53, %v1188_v51  ;;  %v1195_v52 = vsel %vm343_vm0, %v1147_v59, 0.0 }
 0x4bf   : > { %v1191_v60 = vsel %vm343_vm0, %v1139_v46, 0.0 }
 0x4c0   : > { %v1192_v61 = vadd.f32 %v1191_v60, %v1190_v58 }
 0x4c1   : > { %v1637_v63 = vpop.f32.mrb[20].mxu1 }
 0x4c2   : > { %v1194_v0 = vadd.f32 %v1193_v62, %v1192_v61  ;;  %v1151_v1 = vpop.f32.mrb[21].mxu1  ;;  %v1160_v5 = vadd.f32 %v1637_v63, %v1465_v31 }
 0x4c3   : > { %v1152_v57 = vadd.f32 %v1465_v31, %v1151_v1  ;;  %v1638_v2 = vpop.f32.mrb[22].mxu1 }
 0x4c4   : > { %v1196_v3 = vadd.f32 %v1195_v52, %v1194_v0  ;;  %v1154_v4 = vpop.f32.mrb[23].mxu1  ;;  %v1163_v9 = vadd.f32 %v1638_v2, %v1465_v31  ;;  %v1201_v11 = vsel %vm343_vm0, %v1160_v5, 0.0 }
 0x4c5   : > { %v1197_v6 = vsel %vm343_vm0, %v1152_v57, 0.0  ;;  %v1155_v7 = vadd.f32 %v1465_v31, %v1154_v4 }
 0x4c6   : > { %v1198_v8 = vadd.f32 %v1197_v6, %v1196_v3  ;;  %v1203_v15 = vsel %vm343_vm0, %v1163_v9, 0.0 }
 0x4c7   : > { %v1199_v54 = vsel %vm343_vm0, %v1155_v7, 0.0 }
 0x4c8   : > { %v1200_v10 = vadd.f32 %v1199_v54, %v1198_v8 }
 0x4c9   : > { %v1641_v12 = vpop.f32.mrb[24].mxu1 }
 0x4ca   : > { %v1202_v13 = vadd.f32 %v1201_v11, %v1200_v10  ;;  %v1167_v14 = vpop.f32.mrb[25].mxu1  ;;  %v1176_v20 = vadd.f32 %v1641_v12, %v1465_v31 }
 0x4cb   : > { %v1168_v16 = vadd.f32 %v1465_v31, %v1167_v14  ;;  %v1642_v17 = vpop.f32.mrb[26].mxu1 }
 0x4cc   : > { %v1204_v18 = vadd.f32 %v1203_v15, %v1202_v13  ;;  %v1170_v19 = vpop.f32.mrb[27].mxu1  ;;  %v1179_v24 = vadd.f32 %v1642_v17, %v1465_v31  ;;  %v1209_v27 = vsel %vm343_vm0, %v1176_v20, 0.0 }
 0x4cd   : > { %v1205_v21 = vsel %vm343_vm0, %v1168_v16, 0.0  ;;  %v1171_v22 = vadd.f32 %v1465_v31, %v1170_v19 }
 0x4ce   : > { %v1206_v23 = vadd.f32 %v1205_v21, %v1204_v18  ;;  %v1211_v29 = vsel %vm343_vm0, %v1179_v24, 0.0 }
 0x4cf   : > { %v1207_v25 = vsel %vm343_vm0, %v1171_v22, 0.0 }
 0x4d0   : > { %v1208_v26 = vadd.f32 %v1207_v25, %v1206_v23 }
 0x4d2   : > { %v1210_v28 = vadd.f32 %v1209_v27, %v1208_v26 }
 0x4d4   : > { %v1212_v30 = vadd.f32 %v1211_v29, %v1210_v28 }
 0x4d6   : > { %v1213_v32 = vrot.slane %v1212_v30, 4 }
 0x4d8   : > { %v1214_v33 = vadd.f32 %v1213_v32, %v1212_v30 }
 0x4da   : > { %v1215_v35 = vrot.slane %v1214_v33, 2 }
 0x4dc   : > { %v1216_v36 = vadd.f32 %v1215_v35, %v1214_v33 }
 0x4de   : > { %v1217_v39 = vrot.slane %v1216_v36, 1 }
 0x4e0   : > { %v1218_v41 = vadd.f32 %v1217_v39, %v1216_v36 }
 0x4e2   : > { %v1220_v42 = vmul.f32 0.0078125, %v1218_v41 }
 0x4e4   : > { %v2070_v43 = vsub.f32 %v2041_v34, %v1220_v42  ;;  %v2073_v31 = vsub.f32 %v2045_v38, %v1220_v42  ;;  %v2076_v45 = vsub.f32 %v2043_v37, %v1220_v42  ;;  %v2079_v44 = vsub.f32 %v2049_v40, %v1220_v42 }
 0x4e5   : > { %v2081_v47 = vsub.f32 %v1136_v49, %v1220_v42  ;;  %v2083_v48 = vsub.f32 %v1139_v46, %v1220_v42  ;;  %v2085_v50 = vsub.f32 %v1144_v56, %v1220_v42  ;;  %v2087_v51 = vsub.f32 %v1147_v59, %v1220_v42 }
 0x4e6   : > { %v2089_v55 = vsub.f32 %v1152_v57, %v1220_v42  ;;  %v2091_v34 = vsub.f32 %v1155_v7, %v1220_v42  ;;  %v2093_v38 = vsub.f32 %v1160_v5, %v1220_v42  ;;  %v2095_v53 = vsub.f32 %v1163_v9, %v1220_v42 }
 0x4e7   : > { %v2097_v37 = vsub.f32 %v1168_v16, %v1220_v42  ;;  %v2099_v40 = vsub.f32 %v1171_v22, %v1220_v42  ;;  %v2101_v49 = vsub.f32 %v1176_v20, %v1220_v42  ;;  %v2103_v46 = vsub.f32 %v1179_v24, %v1220_v42 }
 0x4e8   : > { %v1237_v56 = vmul.f32 %v2070_v43, %v2070_v43  ;;  %v1238_v58 = vmul.f32 %v2073_v31, %v2073_v31  ;;  %v1239_v59 = vmul.f32 %v2076_v45, %v2076_v45  ;;  %v1240_v60 = vmul.f32 %v2079_v44, %v2079_v44 }
 0x4e9   : > { %v1241_v0 = vmul.f32 %v2081_v47, %v2081_v47  ;;  %v1242_v57 = vmul.f32 %v2083_v48, %v2083_v48  ;;  %v1243_v4 = vmul.f32 %v2085_v50, %v2085_v50  ;;  %v1244_v7 = vmul.f32 %v2087_v51, %v2087_v51 }
 0x4ea   : > { %v1253_v61 = vsel %vm343_vm0, %v1237_v56, 0.0  ;;  %v1254_v62 = vsel %vm343_vm0, %v1238_v58, 0.0  ;;  %v1256_v1 = vsel %vm343_vm0, %v1239_v59, 0.0  ;;  %v1258_v2 = vsel %vm343_vm0, %v1240_v60, 0.0 }
 0x4eb   : > { %v1255_v63 = vadd.f32 %v1254_v62, %v1253_v61  ;;  %v1260_v5 = vsel %vm343_vm0, %v1241_v0, 0.0  ;;  %v1262_v8 = vsel %vm343_vm0, %v1242_v57, 0.0  ;;  %v1245_v54 = vmul.f32 %v2089_v55, %v2089_v55 }
 0x4ec   : > { %v1264_v10 = vsel %vm343_vm0, %v1243_v4, 0.0  ;;  %v1246_v12 = vmul.f32 %v2091_v34, %v2091_v34  ;;  %v1266_v13 = vsel %vm343_vm0, %v1244_v7, 0.0  ;;  %v1247_v15 = vmul.f32 %v2093_v38, %v2093_v38 }
 0x4ed   : > { %v1257_v52 = vadd.f32 %v1256_v1, %v1255_v63  ;;  %v1268_v16 = vsel %vm343_vm0, %v1245_v54, 0.0  ;;  %v1248_v18 = vmul.f32 %v2095_v53, %v2095_v53  ;;  %v1249_v21 = vmul.f32 %v2097_v37, %v2097_v37 }
 0x4ee   : > { %v1270_v19 = vsel %vm343_vm0, %v1246_v12, 0.0  ;;  %v1272_v22 = vsel %vm343_vm0, %v1247_v15, 0.0  ;;  %v1250_v24 = vmul.f32 %v2099_v40, %v2099_v40  ;;  %v1251_v27 = vmul.f32 %v2101_v49, %v2101_v49  ;;  %v1476_v12 = vld [vmem:[%s2239_s6] ss:$0 sm:$0xff] }
 0x4ef   : > { %v1259_v3 = vadd.f32 %v1258_v2, %v1257_v52  ;;  %v1274_v25 = vsel %vm343_vm0, %v1248_v18, 0.0  ;;  %v1276_v28 = vsel %vm343_vm0, %v1249_v21, 0.0  ;;  %v1252_v30 = vmul.f32 %v2103_v46, %v2103_v46  ;;  %v1291_v52 = vld [vmem:[%s2238_s5] sm:$0x1] }
 0x4f0   : > { %v1278_v32 = vsel %vm343_vm0, %v1250_v24, 0.0  ;;  %v1280_v35 = vsel %vm343_vm0, %v1251_v27, 0.0  ;;  %v1296_v0 = vlaneseq  ;;  %v1737_v21 = vld [vmem:[%s1828_s12] sm:$0xff]  ;;  %v1740_v27 = vld [vmem:[%s1828_s12 + $0x18] sm:$0xff] }
 0x4f1   : > { %v1261_v6 = vadd.f32 %v1260_v5, %v1259_v3  ;;  %v1282_v39 = vsel %vm343_vm0, %v1252_v30, 0.0 }
 0x4f2   : > { %v1297_v1 = vshrl.u32 %v1296_v0, 7  ;;  %v1749_v0 = vld [vmem:[%s1828_s12 + $0x60] sm:$0xff] }
 0x4f3   : > { %v1263_v9 = vadd.f32 %v1262_v8, %v1261_v6 }
 0x4f4   : > { %v1298_v57 = vsub.s32 0, %v1297_v1 }
 0x4f5   : > { %v1265_v11 = vadd.f32 %v1264_v10, %v1263_v9 }
 0x4f7   : > { %v1267_v14 = vadd.f32 %v1266_v13, %v1265_v11 }
 0x4f9   : > { %v1269_v17 = vadd.f32 %v1268_v16, %v1267_v14 }
 0x4fb   : > { %v1271_v20 = vadd.f32 %v1270_v19, %v1269_v17 }
 0x4fd   : > { %v1273_v23 = vadd.f32 %v1272_v22, %v1271_v20 }
 0x4ff   : > { %v1275_v26 = vadd.f32 %v1274_v25, %v1273_v23  ;;  %v1738_v23 = vld [vmem:[%s1828_s12 + $0x8] sm:$0xff]  ;;  %v1739_v25 = vld [vmem:[%s1828_s12 + $0x10] sm:$0xff] }
 0x501   : > { %v1277_v29 = vadd.f32 %v1276_v28, %v1275_v26 }
 0x503   : > { %v1279_v33 = vadd.f32 %v1278_v32, %v1277_v29  ;;  %v1741_v29 = vld [vmem:[%s1828_s12 + $0x20] sm:$0xff]  ;;  %v1742_v32 = vld [vmem:[%s1828_s12 + $0x28] sm:$0xff] }
 0x505   : > { %v1281_v36 = vadd.f32 %v1280_v35, %v1279_v33  ;;  %v1743_v35 = vld [vmem:[%s1828_s12 + $0x30] sm:$0xff] }
 0x507   : > { %v1283_v41 = vadd.f32 %v1282_v39, %v1281_v36  ;;  %v1744_v39 = vld [vmem:[%s1828_s12 + $0x38] sm:$0xff] }
 0x509   : > { %v1284_v42 = vrot.slane %v1283_v41, 4 }
 0x50b   : > { %v1285_v56 = vadd.f32 %v1284_v42, %v1283_v41  ;;  %v1745_v42 = vld [vmem:[%s1828_s12 + $0x40] sm:$0xff] }
 0x50d   : > { %v1286_v58 = vrot.slane %v1285_v56, 2 }
 0x50f   : > { %v1287_v59 = vadd.f32 %v1286_v58, %v1285_v56  ;;  %v1746_v58 = vld [vmem:[%s1828_s12 + $0x48] sm:$0xff] }
 0x511   : > { %v1288_v60 = vrot.slane %v1287_v59, 1 }
 0x513   : > { %v1289_v61 = vadd.f32 %v1288_v60, %v1287_v59  ;;  %v1747_v60 = vld [vmem:[%s1828_s12 + $0x50] sm:$0xff] }
 0x515   : > { %v1290_v62 = vmul.f32 0.0078125, %v1289_v61 }
 0x517   : > { %v1292_v63 = vadd.f32 1e-05, %v1290_v62  ;;  %v1748_v62 = vld [vmem:[%s1828_s12 + $0x58] sm:$0xff] }
 0x519   : > { %1735 = vrsqrt.f32 %v1292_v63 }
 0x523   : > { %v1736_v2 = vpop.eup %1735 }
 0x524   : > { %v1294_v3 = vmul.f32 %v1736_v2, %v1291_v52  ;;  %v1750_v52 = vld [vmem:[%s1828_s12 + $0x68] sm:$0xff]  ;;  %v1751_v2 = vld [vmem:[%s1828_s12 + $0x70] sm:$0xff] }
 0x526   : > { %v1299_v4 = vrot.slane %v1294_v3, %v1298_v57 }
 0x528   : > { %v1301_v5 = vmul.f32 %v1299_v4, %v2070_v43  ;;  %v1302_v6 = vmul.f32 %v1299_v4, %v2073_v31  ;;  %v1303_v7 = vmul.f32 %v1299_v4, %v2076_v45  ;;  %v1304_v8 = vmul.f32 %v1299_v4, %v2079_v44 }
 0x529   : > { %v1305_v9 = vmul.f32 %v1299_v4, %v2081_v47  ;;  %v1306_v54 = vmul.f32 %v1299_v4, %v2083_v48  ;;  %v1307_v10 = vmul.f32 %v1299_v4, %v2085_v50  ;;  %v1308_v11 = vmul.f32 %v1299_v4, %v2087_v51 }
 0x52a   : > { %v1309_v43 = vmul.f32 %v1299_v4, %v2089_v55  ;;  %v1310_v31 = vmul.f32 %v1299_v4, %v2091_v34  ;;  %v1311_v45 = vmul.f32 %v1299_v4, %v2093_v38  ;;  %v1312_v44 = vmul.f32 %v1299_v4, %v2095_v53 }
 0x52b   : > { %v1313_v47 = vmul.f32 %v1299_v4, %v2097_v37  ;;  %v1314_v48 = vmul.f32 %v1299_v4, %v2099_v40  ;;  %v1315_v50 = vmul.f32 %v1299_v4, %v2101_v49  ;;  %v1316_v51 = vmul.f32 %v1299_v4, %v2103_v46  ;;  %v1752_v4 = vld [vmem:[%s1828_s12 + $0x78] sm:$0xff] }
 0x52c   : > { %v1324_v13 = vadd.f32 %v1476_v12, %v1301_v5  ;;  %v1325_v14 = vadd.f32 %v1476_v12, %v1302_v6  ;;  %v1326_v15 = vadd.f32 %v1476_v12, %v1303_v7  ;;  %v1327_v55 = vadd.f32 %v1476_v12, %v1304_v8 }
 0x52d   : > { %v1328_v34 = vadd.f32 %v1476_v12, %v1305_v9  ;;  %v1329_v16 = vadd.f32 %v1476_v12, %v1306_v54  ;;  %v1330_v38 = vadd.f32 %v1476_v12, %v1307_v10  ;;  %v1331_v53 = vadd.f32 %v1476_v12, %v1308_v11 }
 0x52e   : > { %v1332_v37 = vadd.f32 %v1476_v12, %v1309_v43  ;;  %v1333_v17 = vadd.f32 %v1476_v12, %v1310_v31  ;;  %v1334_v40 = vadd.f32 %v1476_v12, %v1311_v45  ;;  %v1335_v18 = vadd.f32 %v1476_v12, %v1312_v44 }
 0x52f   : > { %v1336_v49 = vadd.f32 %v1476_v12, %v1313_v47  ;;  %v1337_v46 = vadd.f32 %v1476_v12, %v1314_v48  ;;  %v1338_v19 = vadd.f32 %v1476_v12, %v1315_v50  ;;  %v1339_v20 = vadd.f32 %v1476_v12, %v1316_v51 }
 0x530   : > { %v1340_v22 = vadd.f32 %v1737_v21, %v1324_v13  ;;  %v1341_v24 = vadd.f32 %v1738_v23, %v1325_v14  ;;  %v1342_v26 = vadd.f32 %v1739_v25, %v1326_v15  ;;  %v1343_v28 = vadd.f32 %v1740_v27, %v1327_v55 }
 0x531   : > { %v1344_v30 = vadd.f32 %v1741_v29, %v1328_v34  ;;  %v1345_v33 = vadd.f32 %v1742_v32, %v1329_v16  ;;  %v1346_v36 = vadd.f32 %v1743_v35, %v1330_v38  ;;  %v1347_v41 = vadd.f32 %v1744_v39, %v1331_v53 }
 0x532   : > { %v1348_v56 = vadd.f32 %v1745_v42, %v1332_v37  ;;  %v1349_v59 = vadd.f32 %v1746_v58, %v1333_v17  ;;  %v1350_v61 = vadd.f32 %v1747_v60, %v1334_v40  ;;  %v1351_v63 = vadd.f32 %v1748_v62, %v1335_v18  ;;  %1356 = vst.msk [vmem:[%s2180_s11] sm:$0xff] %vm343_vm0, %v1340_v22 }
 0x533   : > { %1357 = vst.msk [vmem:[%s2180_s11 + $0x8] sm:$0xff] %vm343_vm0, %v1341_v24  ;;  %1358 = vst.msk [vmem:[%s2180_s11 + $0x10] sm:$0xff] %vm343_vm0, %v1342_v26  ;;  %v1352_v1 = vadd.f32 %v1749_v0, %v1336_v49  ;;  %v1353_v57 = vadd.f32 %v1750_v52, %v1337_v46  ;;  %v1354_v3 = vadd.f32 %v1751_v2, %v1338_v19 }
 0x534   : > { %1359 = vst.msk [vmem:[%s2180_s11 + $0x18] sm:$0xff] %vm343_vm0, %v1343_v28  ;;  %v1355_v5 = vadd.f32 %v1752_v4, %v1339_v20  ;;  %1360 = vst.msk [vmem:[%s2180_s11 + $0x20] sm:$0xff] %vm343_vm0, %v1344_v30 }
 0x535   : > { %1361 = vst.msk [vmem:[%s2180_s11 + $0x28] sm:$0xff] %vm343_vm0, %v1345_v33  ;;  %1362 = vst.msk [vmem:[%s2180_s11 + $0x30] sm:$0xff] %vm343_vm0, %v1346_v36 }
 0x536   : > { %1363 = vst.msk [vmem:[%s2180_s11 + $0x38] sm:$0xff] %vm343_vm0, %v1347_v41  ;;  %1364 = vst.msk [vmem:[%s2180_s11 + $0x40] sm:$0xff] %vm343_vm0, %v1348_v56 }
 0x537   : > { %1365 = vst.msk [vmem:[%s2180_s11 + $0x48] sm:$0xff] %vm343_vm0, %v1349_v59  ;;  %1366 = vst.msk [vmem:[%s2180_s11 + $0x50] sm:$0xff] %vm343_vm0, %v1350_v61 }
 0x538   : > { %1367 = vst.msk [vmem:[%s2180_s11 + $0x58] sm:$0xff] %vm343_vm0, %v1351_v63  ;;  %1368 = vst.msk [vmem:[%s2180_s11 + $0x60] sm:$0xff] %vm343_vm0, %v1352_v1 }
 0x539   : > { %1369 = vst.msk [vmem:[%s2180_s11 + $0x68] sm:$0xff] %vm343_vm0, %v1353_v57  ;;  %1370 = vst.msk [vmem:[%s2180_s11 + $0x70] sm:$0xff] %vm343_vm0, %v1354_v3 }
 0x53a   : > { %1371 = vst.msk [vmem:[%s2180_s11 + $0x78] sm:$0xff] %vm343_vm0, %v1355_v5 }
 0x53b PF: > { %s17_s24 = sadd.s32 1, %s1759_s24  }
 0x53c   : > { %p14_p4 = scmp.ge.s32.totalorder %s17_s24, 6  }
 0x53e   :  { %16 = sbr.rel (!%p14_p4) target bundleno = 1 (0x1), region = 78 }

</bundles_post_ra>
